<compile_context>
chip_gen: v7x
topology: tpu7x:2x2x1
jax: 0.10.0
libtpu: 0.0.40
codegen_flags: <defaults>
</compile_context>

<pallas_src>
import jax
import jax.numpy as jnp
from jax.experimental import pallas as pl
from jax.experimental.pallas import tpu as pltpu


# -----------------------------------------------------------------------------
# Fused Pallas kernel: blendshapes + LBS (transl/scale pre-folded into A).
# -----------------------------------------------------------------------------
def lbs_skin_kernel(coeff_ref, agrp_ref, v_template_ref, dirs_ref, lbs_w_ref,
                    verts_ref):
    """One vertex tile, batch folded into the tile.

    coeff_ref  : (Bp, Kp)   bf16  replicated [betas | pose_feature] rows
                                  (row r corresponds to batch r // 3)
    agrp_ref   : (4, Bp, NJ) bf16 coefficient groups of the folded transforms
                                  A' (x, y, z, const); row r = (b, i)=(r//3, r%3)
    v_template : (3, Vt)    f32
    dirs_ref   : (3, Kp, Vt) bf16 concatenated [shapedirs | posedirs]
    lbs_w_ref  : (NJ, Vt)   bf16  skinning weights (transposed)
    verts_ref  : (Bp, Vt)   f32   row r = scale*(skin(v_posed) + transl)
    """
    W = lbs_w_ref[...]                                          # (NJ, Vt)
    coeff = coeff_ref[...]                                      # (Bp, Kp)

    # Constant / translation group (already holds scale*(t + transl)).
    acc = jnp.dot(agrp_ref[3], W, preferred_element_type=jnp.float32)

    # x / y / z groups: posed coordinate slab * per-vertex transform slab.
    for c in range(3):
        posed = v_template_ref[c][None, :] + jnp.dot(
            coeff, dirs_ref[c], preferred_element_type=jnp.float32)  # (Bp, Vt)
        tk = jnp.dot(agrp_ref[c], W, preferred_element_type=jnp.float32)
        acc = acc + tk * posed

    verts_ref[...] = acc


# -----------------------------------------------------------------------------
# Plain-JAX glue (tiny per-joint math)
# -----------------------------------------------------------------------------
def batch_rodrigues(rot_vecs, eps=1e-8):
    """(N, 3) axis-angle -> (N, 3, 3) rotation matrices (matches stock smplx)."""
    n = rot_vecs.shape[0]
    angle = jnp.linalg.norm(rot_vecs + eps, axis=1, keepdims=True)   # (N, 1)
    rot_dir = rot_vecs / angle
    cos = jnp.cos(angle)[:, None]                                    # (N, 1, 1)
    sin = jnp.sin(angle)[:, None]
    rx, ry, rz = rot_dir[:, 0], rot_dir[:, 1], rot_dir[:, 2]
    zeros = jnp.zeros(n, dtype=rot_vecs.dtype)
    K = jnp.stack([zeros, -rz, ry, rz, zeros, -rx, -ry, rx, zeros],
                  axis=1).reshape(n, 3, 3)
    ident = jnp.eye(3, dtype=rot_vecs.dtype)[None]
    return ident + sin * K + (1.0 - cos) * jnp.einsum('nij,njk->nik', K, K)


def batch_rigid_transform(rot_mats, joints, parents):
    """rot_mats (B,NJ,3,3), joints (B,NJ,3) -> posed joints, relative transforms."""
    B, NJ = joints.shape[:2]
    par = jnp.array(parents[1:])
    rel_joints = joints.at[:, 1:].set(joints[:, 1:] - joints[:, par])

    tm = jnp.zeros((B, NJ, 4, 4), dtype=joints.dtype)
    tm = tm.at[:, :, :3, :3].set(rot_mats)
    tm = tm.at[:, :, :3, 3].set(rel_joints)
    tm = tm.at[:, :, 3, 3].set(1.0)

    chain = [tm[:, 0]]
    for i in range(1, NJ):
        chain.append(jnp.matmul(chain[parents[i]], tm[:, i]))
    transforms = jnp.stack(chain, axis=1)             # (B, NJ, 4, 4)

    posed_joints = transforms[:, :, :3, 3]
    rel = transforms.at[:, :, :3, 3].add(
        -jnp.einsum('bjrc,bjc->bjr', transforms[:, :, :3, :3], joints))
    return posed_joints, rel


# -----------------------------------------------------------------------------
# One-time model preprocessing (layout, padding, bf16 cast, pre-tiling,
# pre-contraction of the joint regressor)
# -----------------------------------------------------------------------------
def prepare_model(model, vert_tile=4096):
    """Convert raw SMPL-like model tensors into the kernel layout.

    Tile guidance: v5e/v6e (128 MiB VMEM) -> 4096-8192; v7x (64 MiB VMEM,
    2 TensorCores) -> 2048-4096 and pick vert_tile so nv is even."""
    NB = model['shapedirs'].shape[0]
    P = model['posedirs'].shape[0]
    NJ = model['lbs_t'].shape[0]
    V = model['v_template'].shape[1]

    Vt = int(vert_tile)
    nv = pl.cdiv(V, Vt)
    Vpad = nv * Vt
    vpad = Vpad - V

    K = NB + P
    Kp = ((K + 15) // 16) * 16          # bf16-friendly contraction dim

    hp = jax.lax.Precision.HIGHEST

    # Concatenated blendshape directions: (K, 3, V) -> (nv, 3, Kp, Vt) bf16,
    # one contiguous HBM slab per grid block.
    dirs = jnp.concatenate([model['shapedirs'], model['posedirs']], axis=0)
    dirs = jnp.pad(dirs, ((0, Kp - K), (0, 0), (0, vpad)))     # (Kp, 3, Vpad)
    dirs = dirs.transpose(1, 0, 2)                             # (3, Kp, Vpad)
    dirs = dirs.reshape(3, Kp, nv, Vt).transpose(2, 0, 1, 3)   # (nv, 3, Kp, Vt)
    dirs = dirs.astype(jnp.bfloat16)

    vtpl = jnp.pad(model['v_template'], ((0, 0), (0, vpad)))   # (3, Vpad)
    vtpl = vtpl.reshape(3, nv, Vt).transpose(1, 0, 2)          # (nv, 3, Vt) f32

    lbs = jnp.pad(model['lbs_t'], ((0, 0), (0, vpad)))         # (NJ, Vpad)
    lbs = lbs.reshape(NJ, nv, Vt).transpose(1, 0, 2)           # (nv, NJ, Vt)
    lbs = lbs.astype(jnp.bfloat16)

    return {
        'V': V, 'Vt': Vt, 'nv': nv, 'Vpad': Vpad,
        'NJ': NJ, 'NB': NB, 'P': P, 'K': K, 'Kp': Kp,
        'parents': model['parents'],
        'v_template': vtpl,            # (nv, 3, Vt)       f32
        'dirs': dirs,                  # (nv, 3, Kp, Vt)   bf16
        'lbs_w': lbs,                  # (nv, NJ, Vt)      bf16
        # pre-contracted joint regressor (model constants)
        'jrest0': jnp.einsum('cv,vj->jc', model['v_template'],
                             model['jreg_t'], precision=hp),             # (NJ, 3)
        'jsd': jnp.einsum('lcv,vj->ljc', model['shapedirs'],
                          model['jreg_t'], precision=hp),                # (NB, NJ, 3)
    }


# -----------------------------------------------------------------------------
# BaseWrapper.forward equivalent
# -----------------------------------------------------------------------------
def smpl_forward_pallas(prep, smpl_params):
    shape_comps = smpl_params['shape_comps']          # (B, NB) = betas + expression
    full_pose = smpl_params['full_pose']              # (B, 3*NJ)
    transl = smpl_params['transl']                    # (B, 3)
    scale = smpl_params['scale']                      # (B,)

    B = shape_comps.shape[0]
    V, Vt, nv, Vpad = prep['V'], prep['Vt'], prep['nv'], prep['Vpad']
    NJ, NB, P, K, Kp = prep['NJ'], prep['NB'], prep['P'], prep['K'], prep['Kp']
    hp = jax.lax.Precision.HIGHEST

    # Rest joints via the pre-contracted regressor (== J_reg @ v_shaped).
    j_rest = prep['jrest0'][None] + jnp.einsum(
        'bl,ljc->bjc', shape_comps, prep['jsd'], precision=hp)   # (B, NJ, 3)

    # Tiny per-joint glue: Rodrigues + kinematic chain.
    rot_mats = batch_rodrigues(full_pose.reshape(-1, 3)).reshape(B, NJ, 3, 3)
    pose_feature = (rot_mats[:, 1:] - jnp.eye(3, dtype=rot_mats.dtype)).reshape(B, P)
    posed_joints, A = batch_rigid_transform(rot_mats, j_rest, prep['parents'])

    # Fold transl and scale into the skinning transforms:
    #   out = scale * (T @ [v;1] + transl)  and  sum_j W[j, v] == 1,
    # so A'[:, :3, :3] = scale*A[:, :3, :3], A'[:, :3, 3] = scale*(A[:, :3, 3]+transl).
    A34 = A[:, :, :3, :]                                        # (B, NJ, 3, 4)
    A34 = A34.at[..., 3].add(transl[:, None, :])
    A34 = A34 * scale[:, None, None, None]

    # Coefficient groups (x, y, z, const): (4, 3B, NJ), row r -> (b, i) = (r//3, r%3).
    Bp = ((3 * B + 7) // 8) * 8
    agrp = A34.transpose(3, 0, 2, 1).reshape(4, 3 * B, NJ)
    agrp = jnp.pad(agrp, ((0, 0), (0, Bp - 3 * B), (0, 0))).astype(jnp.bfloat16)

    # Replicated [betas | pose_feature] rows matching the (b, i) row layout.
    coeff = jnp.concatenate([shape_comps, pose_feature], axis=1)    # (B, K)
    coeffR = jnp.repeat(coeff, 3, axis=0)                           # (3B, K)
    coeffR = jnp.pad(coeffR, ((0, Bp - 3 * B), (0, Kp - K))).astype(jnp.bfloat16)

    # VMEM budget: double-buffered per-tile blocks + headroom (capped for v7x).
    blk_bytes = Vt * (3 * Kp * 2 + NJ * 2 + 3 * 4 + Bp * 4)
    vmem_limit = int(min(max(4 * blk_bytes + (2 << 20), 32 << 20), 64 << 20))

    verts_p = pl.pallas_call(
        lbs_skin_kernel,
        out_shape=jax.ShapeDtypeStruct((Bp, Vpad), jnp.float32),
        grid=(nv,),
        in_specs=[
            pl.BlockSpec((Bp, Kp), lambda v: (0, 0)),                # coeff (bf16)
            pl.BlockSpec((4, Bp, NJ), lambda v: (0, 0, 0)),          # A' groups (bf16)
            pl.BlockSpec((None, 3, Vt), lambda v: (v, 0, 0)),        # v_template
            pl.BlockSpec((None, 3, Kp, Vt), lambda v: (v, 0, 0, 0)), # dirs (bf16)
            pl.BlockSpec((None, NJ, Vt), lambda v: (v, 0, 0)),       # lbs weights^T
        ],
        out_specs=pl.BlockSpec((Bp, Vt), lambda v: (0, v)),
        compiler_params=pltpu.CompilerParams(
            dimension_semantics=("parallel",),
            vmem_limit_bytes=vmem_limit),
    )(coeffR, agrp, prep['v_template'], prep['dirs'], prep['lbs_w'])

    # Drop row / vertex padding; convert to the external (B, V, 3) convention once.
    vertices = verts_p[:3 * B, :V].reshape(B, 3, V).transpose(0, 2, 1)
    joints = (posed_joints + transl[:, None, :]) * scale[:, None, None]
    return vertices, joints


# -----------------------------------------------------------------------------
# Pure-JAX reference (for correctness check)
# -----------------------------------------------------------------------------
def smpl_forward_reference(model, smpl_params):
    shape_comps = smpl_params['shape_comps']
    full_pose = smpl_params['full_pose']
    transl = smpl_params['transl']
    scale = smpl_params['scale']
    B = shape_comps.shape[0]
    NJ = model['lbs_t'].shape[0]

    hp = jax.lax.Precision.HIGHEST
    v_shaped = model['v_template'][None] + jnp.einsum(
        'bl,lcv->bcv', shape_comps, model['shapedirs'], precision=hp)
    j_rest = jnp.einsum('bcv,vj->bjc', v_shaped, model['jreg_t'], precision=hp)

    rot_mats = batch_rodrigues(full_pose.reshape(-1, 3)).reshape(B, NJ, 3, 3)
    pose_feature = (rot_mats[:, 1:] - jnp.eye(3)).reshape(B, -1)
    v_posed = v_shaped + jnp.einsum('bp,pcv->bcv', pose_feature,
                                    model['posedirs'], precision=hp)
    posed_joints, A = batch_rigid_transform(rot_mats, j_rest, model['parents'])

    W = model['lbs_t'].T                              # (V, NJ)
    T = jnp.einsum('vj,bjrc->bvrc', W, A, precision=hp)
    v_posed_bvc = v_posed.transpose(0, 2, 1)
    vh = jnp.concatenate(
        [v_posed_bvc, jnp.ones((B, v_posed_bvc.shape[1], 1))], axis=-1)
    verts = jnp.einsum('bvrc,bvc->bvr', T, vh, precision=hp)[:, :, :3]
    verts = (verts + transl[:, None, :]) * scale[:, None, None]
    joints = (posed_joints + transl[:, None, :]) * scale[:, None, None]
    return verts, joints


# -----------------------------------------------------------------------------
# Main
# -----------------------------------------------------------------------------
if __name__ == "__main__":
    B = 2          # batch
    V = 500        # vertices (deliberately NOT a multiple of the tile)
    NJ = 8         # joints
    N_BETAS = 10
    N_EXPR = 6
    NB = N_BETAS + N_EXPR
    P = 9 * (NJ - 1)
    parents = (0, 0, 0, 1, 2, 3, 4, 5)

    key = jax.random.PRNGKey(0)
    ks = jax.random.split(key, 12)

    # Deterministic synthetic SMPL-like model parameters.
    model = {
        'v_template': jax.random.normal(ks[0], (3, V), jnp.float32) * 0.5,
        'shapedirs':  jax.random.normal(ks[1], (NB, 3, V), jnp.float32) * 0.03,
        'posedirs':   jax.random.normal(ks[2], (P, 3, V), jnp.float32) * 0.01,
        'jreg_t':     jax.nn.softmax(
            jax.random.normal(ks[3], (V, NJ), jnp.float32), axis=0),   # (V, NJ)
        'lbs_t':      jax.nn.softmax(
            2.0 * jax.random.normal(ks[4], (NJ, V), jnp.float32), axis=0),  # (NJ, V)
        'parents':    parents,
    }

    # Deterministic smpl_params (betas/expression/pose/transl/scale).
    betas = jax.random.normal(ks[5], (B, N_BETAS), jnp.float32) * 0.5
    expression = jax.random.normal(ks[6], (B, N_EXPR), jnp.float32) * 0.5
    global_orient = jax.random.normal(ks[7], (B, 3), jnp.float32) * 0.2
    body_pose = jax.random.normal(ks[8], (B, 3 * (NJ - 1)), jnp.float32) * 0.2
    smpl_params = {
        'shape_comps': jnp.concatenate([betas, expression], axis=1),     # (B, NB)
        'full_pose':   jnp.concatenate([global_orient, body_pose], axis=1),
        'transl':      jax.random.normal(ks[9], (B, 3), jnp.float32),
        'scale':       jnp.array([1.0, 1.5], dtype=jnp.float32),
    }

    # Small tile for the tiny test so padding + a multi-tile grid are
    # exercised (Vpad = 512, nv = 2).  Real SMPL-X sizes use the default 4096
    # (v5e/v6e) or 2048-4096 with an even nv (v7x).
    prep = prepare_model(model, vert_tile=256)

    verts, joints = smpl_forward_pallas(prep, smpl_params)
    jax.block_until_ready((verts, joints))

    verts_ref, joints_ref = smpl_forward_reference(model, smpl_params)
    assert verts.shape == (B, V, 3) and joints.shape == (B, NJ, 3)
    assert bool(jnp.all(jnp.isfinite(verts))) and bool(jnp.all(jnp.isfinite(joints)))
    assert bool(jnp.allclose(verts, verts_ref, atol=5e-2, rtol=5e-2)), \
        float(jnp.max(jnp.abs(verts - verts_ref)))
    assert bool(jnp.allclose(joints, joints_ref, atol=5e-2, rtol=5e-2)), \
        float(jnp.max(jnp.abs(joints - joints_ref)))

    print("KERNEL_OK")
</pallas_src>

<mosaic_0001>
module attributes {stable_mosaic.version = 11 : i64} {
  func.func @lbs_skin_kernel(%arg0: i32, %arg1: memref<8x80xbf16, #tpu.memory_space<vmem>>, %arg2: memref<4x8x8xbf16, #tpu.memory_space<vmem>>, %arg3: memref<1x3x256xf32, #tpu.memory_space<vmem>>, %arg4: memref<1x3x80x256xbf16, #tpu.memory_space<vmem>>, %arg5: memref<1x8x256xbf16, #tpu.memory_space<vmem>>, %arg6: memref<8x256xf32, #tpu.memory_space<vmem>>) attributes {dimension_semantics = [#tpu.dimension_semantics<parallel>], iteration_bounds = array<i64: 2>, scalar_prefetch = 0 : i64, scratch_operands = 0 : i64, tpu.core_type = #tpu.core_type<tc>, window_params = [{pipeline_mode = #tpu.pipeline_mode<synchronous>, transform_indices = @transform_0, window_bounds = array<i64: 8, 80>}, {pipeline_mode = #tpu.pipeline_mode<synchronous>, transform_indices = @transform_1, window_bounds = array<i64: 4, 8, 8>}, {transform_indices = @transform_2, window_bounds = array<i64: 1, 3, 256>}, {transform_indices = @transform_3, window_bounds = array<i64: 1, 3, 80, 256>}, {transform_indices = @transform_4, window_bounds = array<i64: 1, 8, 256>}, {transform_indices = @transform_5, window_bounds = array<i64: 8, 256>}]} {
    %c0 = arith.constant 0 : index
    %c0_0 = arith.constant 0 : index
    %c0_1 = arith.constant 0 : index
    %0 = vector.load %arg5[%c0, %c0_0, %c0_1] : memref<1x8x256xbf16, #tpu.memory_space<vmem>>, vector<1x8x256xbf16>
    %1 = vector.shape_cast %0 : vector<1x8x256xbf16> to vector<8x256xbf16>
    %c0_2 = arith.constant 0 : index
    %c0_3 = arith.constant 0 : index
    %2 = vector.load %arg1[%c0_2, %c0_3] : memref<8x80xbf16, #tpu.memory_space<vmem>>, vector<8x80xbf16>
    %c3 = arith.constant 3 : index
    %c0_4 = arith.constant 0 : index
    %c0_5 = arith.constant 0 : index
    %3 = vector.load %arg2[%c3, %c0_4, %c0_5] : memref<4x8x8xbf16, #tpu.memory_space<vmem>>, vector<1x8x8xbf16>
    %4 = vector.shape_cast %3 : vector<1x8x8xbf16> to vector<8x8xbf16>
    %cst = arith.constant dense<0.000000e+00> : vector<8x256xf32>
    %5 = tpu.matmul %4, %1, %cst {dimension_numbers = #tpu.dot_dimension_numbers<[1], [0], [0], [1], [0, 0, 1, 1], [], []>} : vector<8x8xbf16>, vector<8x256xbf16>, vector<8x256xf32> -> vector<8x256xf32>
    %c0_6 = arith.constant 0 : index
    %c0_7 = arith.constant 0 : index
    %c0_8 = arith.constant 0 : index
    %6 = vector.load %arg3[%c0_6, %c0_7, %c0_8] : memref<1x3x256xf32, #tpu.memory_space<vmem>>, vector<1x1x256xf32>
    %7 = vector.shape_cast %6 : vector<1x1x256xf32> to vector<256xf32>
    %8 = vector.shape_cast %7 : vector<256xf32> to vector<1x256xf32>
    %c0_9 = arith.constant 0 : index
    %c0_10 = arith.constant 0 : index
    %c0_11 = arith.constant 0 : index
    %c0_12 = arith.constant 0 : index
    %9 = vector.load %arg4[%c0_9, %c0_10, %c0_11, %c0_12] : memref<1x3x80x256xbf16, #tpu.memory_space<vmem>>, vector<1x1x80x256xbf16>
    %10 = vector.shape_cast %9 : vector<1x1x80x256xbf16> to vector<80x256xbf16>
    %cst_13 = arith.constant dense<0.000000e+00> : vector<8x256xf32>
    %11 = tpu.matmul %2, %10, %cst_13 {dimension_numbers = #tpu.dot_dimension_numbers<[1], [0], [0], [1], [0, 0, 1, 1], [], []>} : vector<8x80xbf16>, vector<80x256xbf16>, vector<8x256xf32> -> vector<8x256xf32>
    %12 = vector.broadcast %8 : vector<1x256xf32> to vector<8x256xf32>
    %13 = arith.addf %12, %11 : vector<8x256xf32>
    %c0_14 = arith.constant 0 : index
    %c0_15 = arith.constant 0 : index
    %c0_16 = arith.constant 0 : index
    %14 = vector.load %arg2[%c0_14, %c0_15, %c0_16] : memref<4x8x8xbf16, #tpu.memory_space<vmem>>, vector<1x8x8xbf16>
    %15 = vector.shape_cast %14 : vector<1x8x8xbf16> to vector<8x8xbf16>
    %cst_17 = arith.constant dense<0.000000e+00> : vector<8x256xf32>
    %16 = tpu.matmul %15, %1, %cst_17 {dimension_numbers = #tpu.dot_dimension_numbers<[1], [0], [0], [1], [0, 0, 1, 1], [], []>} : vector<8x8xbf16>, vector<8x256xbf16>, vector<8x256xf32> -> vector<8x256xf32>
    %17 = arith.mulf %16, %13 : vector<8x256xf32>
    %18 = arith.addf %5, %17 : vector<8x256xf32>
    %c0_18 = arith.constant 0 : index
    %c1 = arith.constant 1 : index
    %c0_19 = arith.constant 0 : index
    %19 = vector.load %arg3[%c0_18, %c1, %c0_19] : memref<1x3x256xf32, #tpu.memory_space<vmem>>, vector<1x1x256xf32>
    %20 = vector.shape_cast %19 : vector<1x1x256xf32> to vector<256xf32>
    %21 = vector.shape_cast %20 : vector<256xf32> to vector<1x256xf32>
    %c0_20 = arith.constant 0 : index
    %c1_21 = arith.constant 1 : index
    %c0_22 = arith.constant 0 : index
    %c0_23 = arith.constant 0 : index
    %22 = vector.load %arg4[%c0_20, %c1_21, %c0_22, %c0_23] : memref<1x3x80x256xbf16, #tpu.memory_space<vmem>>, vector<1x1x80x256xbf16>
    %23 = vector.shape_cast %22 : vector<1x1x80x256xbf16> to vector<80x256xbf16>
    %cst_24 = arith.constant dense<0.000000e+00> : vector<8x256xf32>
    %24 = tpu.matmul %2, %23, %cst_24 {dimension_numbers = #tpu.dot_dimension_numbers<[1], [0], [0], [1], [0, 0, 1, 1], [], []>} : vector<8x80xbf16>, vector<80x256xbf16>, vector<8x256xf32> -> vector<8x256xf32>
    %25 = vector.broadcast %21 : vector<1x256xf32> to vector<8x256xf32>
    %26 = arith.addf %25, %24 : vector<8x256xf32>
    %c1_25 = arith.constant 1 : index
    %c0_26 = arith.constant 0 : index
    %c0_27 = arith.constant 0 : index
    %27 = vector.load %arg2[%c1_25, %c0_26, %c0_27] : memref<4x8x8xbf16, #tpu.memory_space<vmem>>, vector<1x8x8xbf16>
    %28 = vector.shape_cast %27 : vector<1x8x8xbf16> to vector<8x8xbf16>
    %cst_28 = arith.constant dense<0.000000e+00> : vector<8x256xf32>
    %29 = tpu.matmul %28, %1, %cst_28 {dimension_numbers = #tpu.dot_dimension_numbers<[1], [0], [0], [1], [0, 0, 1, 1], [], []>} : vector<8x8xbf16>, vector<8x256xbf16>, vector<8x256xf32> -> vector<8x256xf32>
    %30 = arith.mulf %29, %26 : vector<8x256xf32>
    %31 = arith.addf %18, %30 : vector<8x256xf32>
    %c0_29 = arith.constant 0 : index
    %c2 = arith.constant 2 : index
    %c0_30 = arith.constant 0 : index
    %32 = vector.load %arg3[%c0_29, %c2, %c0_30] : memref<1x3x256xf32, #tpu.memory_space<vmem>>, vector<1x1x256xf32>
    %33 = vector.shape_cast %32 : vector<1x1x256xf32> to vector<256xf32>
    %34 = vector.shape_cast %33 : vector<256xf32> to vector<1x256xf32>
    %c0_31 = arith.constant 0 : index
    %c2_32 = arith.constant 2 : index
    %c0_33 = arith.constant 0 : index
    %c0_34 = arith.constant 0 : index
    %35 = vector.load %arg4[%c0_31, %c2_32, %c0_33, %c0_34] : memref<1x3x80x256xbf16, #tpu.memory_space<vmem>>, vector<1x1x80x256xbf16>
    %36 = vector.shape_cast %35 : vector<1x1x80x256xbf16> to vector<80x256xbf16>
    %cst_35 = arith.constant dense<0.000000e+00> : vector<8x256xf32>
    %37 = tpu.matmul %2, %36, %cst_35 {dimension_numbers = #tpu.dot_dimension_numbers<[1], [0], [0], [1], [0, 0, 1, 1], [], []>} : vector<8x80xbf16>, vector<80x256xbf16>, vector<8x256xf32> -> vector<8x256xf32>
    %38 = vector.broadcast %34 : vector<1x256xf32> to vector<8x256xf32>
    %39 = arith.addf %38, %37 : vector<8x256xf32>
    %c2_36 = arith.constant 2 : index
    %c0_37 = arith.constant 0 : index
    %c0_38 = arith.constant 0 : index
    %40 = vector.load %arg2[%c2_36, %c0_37, %c0_38] : memref<4x8x8xbf16, #tpu.memory_space<vmem>>, vector<1x8x8xbf16>
    %41 = vector.shape_cast %40 : vector<1x8x8xbf16> to vector<8x8xbf16>
    %cst_39 = arith.constant dense<0.000000e+00> : vector<8x256xf32>
    %42 = tpu.matmul %41, %1, %cst_39 {dimension_numbers = #tpu.dot_dimension_numbers<[1], [0], [0], [1], [0, 0, 1, 1], [], []>} : vector<8x8xbf16>, vector<8x256xbf16>, vector<8x256xf32> -> vector<8x256xf32>
    %43 = arith.mulf %42, %39 : vector<8x256xf32>
    %44 = arith.addf %31, %43 : vector<8x256xf32>
    %c0_40 = arith.constant 0 : index
    %c0_41 = arith.constant 0 : index
    %45 = vector.load %arg6[%c0_40, %c0_41] : memref<8x256xf32, #tpu.memory_space<vmem>>, vector<8x256xf32>
    tpu.vector_store %arg6[%c0_40, %c0_41], %44 {strides = array<i32>} : memref<8x256xf32, #tpu.memory_space<vmem>>, vector<8x256xf32>,
    return
  }
  func.func @transform_0(%arg0: i32) -> (i32, i32) {
    %c0_i32 = arith.constant 0 : i32
    %c0_i32_0 = arith.constant 0 : i32
    %c0_i32_1 = arith.constant 0 : i32
    return %c0_i32, %c0_i32_0 : i32, i32
  }
  func.func @transform_1(%arg0: i32) -> (i32, i32, i32) {
    %c0_i32 = arith.constant 0 : i32
    %c0_i32_0 = arith.constant 0 : i32
    %c0_i32_1 = arith.constant 0 : i32
    %c0_i32_2 = arith.constant 0 : i32
    return %c0_i32, %c0_i32_0, %c0_i32_1 : i32, i32, i32
  }
  func.func @transform_2(%arg0: i32) -> (i32, i32, i32) {
    %c0_i32 = arith.constant 0 : i32
    %c0_i32_0 = arith.constant 0 : i32
    %c0_i32_1 = arith.constant 0 : i32
    return %arg0, %c0_i32, %c0_i32_0 : i32, i32, i32
  }
  func.func @transform_3(%arg0: i32) -> (i32, i32, i32, i32) {
    %c0_i32 = arith.constant 0 : i32
    %c0_i32_0 = arith.constant 0 : i32
    %c0_i32_1 = arith.constant 0 : i32
    %c0_i32_2 = arith.constant 0 : i32
    return %arg0, %c0_i32, %c0_i32_0, %c0_i32_1 : i32, i32, i32, i32
  }
  func.func @transform_4(%arg0: i32) -> (i32, i32, i32) {
    %c0_i32 = arith.constant 0 : i32
    %c0_i32_0 = arith.constant 0 : i32
    %c0_i32_1 = arith.constant 0 : i32
    return %arg0, %c0_i32, %c0_i32_0 : i32, i32, i32
  }
  func.func @transform_5(%arg0: i32) -> (i32, i32) {
    %c0_i32 = arith.constant 0 : i32
    %c0_i32_0 = arith.constant 0 : i32
    return %c0_i32, %arg0 : i32, i32
  }
}

</mosaic_0001>

<bundles_post_ra>
// kernel: tpu_custom_call.1
= control target key start
LH: loop header
LB: loop body
LE: loop exit
PB: predicated region body
PF: predicated region fallthrough
CT: control target
= control target key end

     0   :  { %10 = vsyncpa [#allocation3], 0  ;;  %s1638_s0 = inlined_call_operand.hbm [shape: bf16[8,80], index: 0, kind: input, shape index: {}]   ;;  %s1639_s1 = inlined_call_operand.vmem [shape: bf16[4,8,8], index: 1, kind: input, shape index: {}]   ;;  %s1640_s2 = inlined_call_operand.vmem [shape: f32[2,3,256], index: 2, kind: input, shape index: {}]   ;;  %s1641_s3 = inlined_call_operand.hbm [shape: bf16[2,3,80,256], index: 3, kind: input, shape index: {}]   ;;  %s1642_s4 = inlined_call_operand.vmem [shape: bf16[2,8,256], index: 4, kind: input, shape index: {}]   ;;  %s1643_s5 = inlined_call_operand.hbm [shape: f32[8,512], index: 5, kind: output, shape index: {}]  }
   0x1   :  { %11 = vsyncpa [#allocation6], 0 }
   0x2   :  { %13 = vsyncpa [#allocation6 + $0x1], 0 }
   0x3   :  { %14 = vsyncpa [#allocation4], 0 }
   0x4   :  { %16 = vsyncpa [#allocation4 + $0x1], 0  ;;  %s1346_s18 = smov 0   ;;  %s1348_s19 = smov 0  }
   0x5   :  { %s1350_s20 = smov 0   ;;  %s1352_s21 = smov 0  }
   0x6 LB: > { %s1367_s22 = sadd.s32 4294967295, %s1308_s21   ;;  %s982_s23 = sadd.s32 4294967294, %s1308_s21   ;;  %s1308_s21 = sphi %s1352_s21, %s1668_s21   ;;  %s1304_s20 = sphi %s1350_s20, %s1667_s20   ;;  %s1300_s19 = sphi %s1348_s19, %s1666_s19   ;;  %s1296_s18 = sphi %s1346_s18, %s1665_s18  }
   0x7   : > { %s1371_s24 = sadd.s32 1, %s1308_s21   ;;  %s97_s25 = sadd.s32 1, %s1304_s20 }
   0x8   : > { %s94_s26 = ssub.s32 %s1308_s21, %s1371_s24  ;;  %p104_p0 = scmp.ne.s32.totalorder %s1304_s20, %s1300_s19 }
   0x9   : > { %p95_p1 = scmp.eq.s32.totalorder %s94_s26, 0  ;;  %p105_p2 = scmp.eq.s32.totalorder %s1308_s21, 0 }
   0xa   : > { %p110_p3 = scmp.ne.s32.totalorder %s1300_s19, %s1296_s18  ;;  %p1644_p4 = scmp.eq.s32.totalorder %s1367_s22, 0 }
   0xb   : > { %s1383_s27 = scalar_select %p95_p1, %s1304_s20, %s97_s25  }
   0xc   : > { %p1385_p5 = por %p105_p2, %p104_p0  ;;  %p1391_p6 = por %p1644_p4, %p110_p3 }
   0xd   : > { %p160_p7 = scmp.eq.s32.totalorder %s1367_s22, 1  ;;  %p166_p8 = scmp.eq.s32.totalorder %s982_s23, 1 }
   0xe   : > { %s1650_s29 = scalar_select %p1391_p6, 1, 0 }
   0xf   : > { %p983_p9 = scmp.ge.s32.totalorder %s1308_s21, 1  ;;  %p173_p10 = scmp.lt.s32.totalorder %s1308_s21, 3 }
  0x10   : > { %p1398_p11 = por %p160_p7, %p104_p0  ;;  %p1402_p12 = por %p166_p8, %p110_p3 }
  0x11   : > { %p1406_p13 = pnand %p983_p9, %p173_p10  ;;  %s1310_s8 = smov [#allocation2]  }
  0x12   : > { %s1651_s30 = scalar_select %p1398_p11, 1, 0 }
  0x13   : > { %s1652_s6 = scalar_select %p1402_p12, 1, 0 }
  0x14   : > { %s1653_s7 = scalar_select %p1406_p13, 1, 0 }
  0x15   : > { %p1081_p2 = pneg %p1406_p13  ;;  %s186_s9 = sshll.u32 %s1310_s8, 4  ;;  %s187_s9 = int_to_ptr.vmem [resolvable:$true] %s186_s9 }
  0x16   : > { %p1094_p4 = scmp.lt.s32.totalorder %s1308_s21, 2  ;;  %p1654_p0 = scmp.eq.s32.totalorder %s1367_s22, 0 }
  0x17   : > { %s208_s11 = sand.u32 1, %s1304_s20   ;;  %s1180_s16 = scalar_lea.hbm %s1638_s0, 64 }
  0x18   : > { %p1416_p7 = pnand %p1081_p2, %p1654_p0  ;;  %p1423_p3 = pnand %p1094_p4, %p1385_p5 }
  0x19   : > { %s1070_s13 = smul.u32 240, %s208_s11  ;;  %p1181_p8 = scmp.ne.s32.totalorder %s1638_s0, %s1180_s16 }
  0x1a   : > { %s1656_s12 = scalar_select %p1423_p3, 1, 0 }
  0x1b   : > { %p1182_p9 = pneg %p1416_p7  ;;  %p1187_p4 = scmp.lt.u32.totalorder %s1180_s16, %s1638_s0 }
  0x1d   : > { %p1183_p10 = pnand %p1182_p9, %p1181_p8 }
  0x1f   : > { %p1184_p2 = pneg %p1183_p10 }
  0x21   : > { %p1189_p5 = pnand %p1187_p4, %p1184_p2 }
  0x23   : > { %1192 = shalt.err (!%p1189_p5)
}
  0x24   : > { %s1193_s28 = scalar_lea.vmem %s187_s9, 64  ;;  %p1201_p11 = scmp.lt.s32.totalorder %s187_s9, %s187_s9 }
  0x25   : > { %p1194_p0 = scmp.ne.s32.totalorder %s187_s9, %s1193_s28  ;;  %p1202_p6 = scmp.lt.s32.totalorder %s1193_s28, %s1193_s28 }
  0x27   : > { %p1196_p1 = pnand %p1194_p0, %p1182_p9  ;;  %p1203_p13 = por %p1202_p6, %p1201_p11 }
  0x29   : > { %p1197_p12 = pneg %p1196_p1 }
  0x2b   : > { %p1204_p3 = pnand %p1203_p13, %p1197_p12 }
  0x2d   : > { %1207 = shalt.err (!%p1204_p3)
}
  0x2e   : > { %1084 = dma.hbm_to_vmem [thread:$0]  (!%p1416_p7), %s1638_s0, 64, %s187_s9, [#allocation3]  }
  0x2f   : > { %s1071_s15 = smul.u32 3840, %s1308_s21  ;;  %s212_s16 = scalar_lea.vmem [#allocation5], %s1070_s13 }
  0x30   : > { %s219_s17 = sshll.u32 %s212_s16, 4  ;;  %s1451_s10 = scalar_lea.sflag [#allocation6], %s208_s11  ;;  %s1444_s17 = int_to_ptr.vmem [resolvable:$true] %s219_s17 }
  0x31   : > { %s1449_s26 = scalar_lea.hbm %s1641_s3, %s1071_s15  ;;  %p1657_p11 = scmp.ne.s32.totalorder %s1656_s12, 0 }
  0x32   : > { %s1208_s28 = scalar_lea.hbm %s1449_s26, 3840  ;;  %s1213_s8 = scalar_lea.hbm %s1641_s3, 7680 }
  0x33   : > { %p1209_p6 = scmp.ne.s32.totalorder %s1449_s26, %s1208_s28  ;;  %p1210_p12 = pneg %p1657_p11 }
  0x34   : > { %p1214_p7 = scmp.lt.u32.totalorder %s1449_s26, %s1641_s3  ;;  %p1215_p3 = scmp.lt.u32.totalorder %s1213_s8, %s1208_s28 }
  0x35   : > { %p1211_p13 = pnand %p1210_p12, %p1209_p6  ;;  %p1217_p9 = scmp.lt.u32.totalorder %s1208_s28, %s1449_s26 }
  0x36   : > { %p1216_p8 = por %p1215_p3, %p1214_p7 }
  0x37   : > { %p1212_p1 = pneg %p1211_p13 }
  0x38   : > { %p1218_p10 = por %p1217_p9, %p1216_p8 }
  0x3a   : > { %p1219_p2 = pnand %p1218_p10, %p1212_p1 }
  0x3c   : > { %1222 = shalt.err (!%p1219_p2)
}
  0x3d   : > { %s1223_s11 = scalar_lea.vmem %s1444_s17, 3840  ;;  %s1311_s16 = smov [#allocation5]  }
  0x3e   : > { %p1224_p4 = scmp.ne.s32.totalorder %s1444_s17, %s1223_s11  ;;  %s1228_s23 = sshll.u32 %s1311_s16, 4  ;;  %s1229_s23 = int_to_ptr.vmem [resolvable:$false] %s1228_s23 }
  0x3f   : > { %s1230_s25 = scalar_lea.vmem %s1229_s23, 7680  ;;  %p1231_p6 = scmp.lt.s32.totalorder %s1444_s17, %s1229_s23 }
  0x40   : > { %p1226_p5 = pnand %p1224_p4, %p1210_p12  ;;  %p1232_p13 = scmp.lt.s32.totalorder %s1230_s25, %s1223_s11 }
  0x42   : > { %p1227_p0 = pneg %p1226_p5  ;;  %p1233_p7 = por %p1232_p13, %p1231_p6 }
  0x44   : > { %p1234_p3 = pnand %p1233_p7, %p1227_p0 }
  0x46   : > { %1237 = shalt.err (!%p1234_p3)
}
  0x47   : > { %s1312_s28 = smov 128   ;;  %s1313_s9 = smov 8  }
  0x48   : > { %1088 = dma.hbm_to_vmem [thread:$0]  (!%p1657_p11), %s1449_s26, 3840, %s1444_s17, %s1451_s10, %s1312_s28, %s1312_s28, %s1313_s9  }
  0x49   : > { %p1658_p12 = scmp.ne.s32.totalorder %s1653_s7, 0 }
  0x4a   : > { %p1659_p1 = scmp.eq.s32.totalorder (!%p1658_p12), %s1367_s22, 0 }
  0x4b   : > { %239 = sbr.rel (%p1658_p12) target bundleno = 372 (0x174), region = 40 }
  0x52   : > { %1283 = dma.done.wait (%p1659_p1), [#allocation3], 64   ;;  %p1660_p8 = pmov %p1659_p1 }
  0x53   : > { %s1486_s13 = sand.u32 1, %s1300_s19   ;;  %p1661_p11 = scmp.ne.s32.totalorder %s1650_s29, 0 }
  0x54   : > { %1285 = vsyncadd (%p1660_p8), [#allocation3], 4294967232  ;;  %s1072_s8 = smul.u32 240, %s1486_s13  ;;  %s246_s14 = scalar_lea.sflag [#allocation6], %s1486_s13 }
  0x56   : > { %s1490_s15 = scalar_lea.vmem [#allocation5], %s1072_s8 }
  0x57   : > { %1287 = dma.done.wait (%p1661_p11), %s246_s14, 3840  }
  0x58   : > { %1289 = vsyncadd (%p1661_p11), %s246_s14, 4294963456  ;;  %p286_p9 = scmp.lt.s32.totalorder %s1367_s22, 1  ;;  %v1314_v0 = vmov 0   ;;  %v1133_v1 = vld [vmem:[%s1490_s15 + $0x4] ss:$8 sps:$4 sm:$0xff]   ;;  %vm431_vm0 = vcmask 1043456   ;;  %v409_v40 = vlaneseq }
  0x59   : > { %470 = vmatprep.mubr.bf16.mxu1 %v1314_v0  ;;  %399 = vmatprep.mubr.bf16.mxu0 %v1314_v0  ;;  %v1136_v3 = vld [vmem:[%s1490_s15] ss:$8 sps:$4 sm:$0xff]   ;;  %v1138_v6 = vld [vmem:[%s1490_s15 + $0x14] ss:$8 sps:$4 sm:$0xff]   ;;  %v1140_v7 = vld [vmem:[%s1490_s15 + $0x10] ss:$8 sps:$4 sm:$0xff]  }
  0x5a   : > { %s1500_s7 = scalar_select %p286_p9, %s1367_s22, 1  ;;  %367 = vmatprep.subr.bf16.mxu0 %v1133_v1  ;;  %v1141_v9 = vld [vmem:[%s1490_s15 + $0x24] ss:$8 sps:$4 sm:$0xff]   ;;  %vm427_vm1 = vcmask 64512   ;;  %v1146_v11 = vld [vmem:[%s1490_s15 + $0x54] ss:$8 sps:$4 sm:$0xff]  }
  0x5b   : > { %368 = vmatpush1.bf16.msra.mxu0 %v1136_v3  ;;  %v421_v10 = vld [vmem:[%s1639_s1] sm:$0xf]  ;;  %v1143_v12 = vld [vmem:[%s1490_s15 + $0x20] ss:$8 sps:$4 sm:$0xff]   ;;  %v1144_v14 = vld [vmem:[%s1490_s15 + $0x50] ss:$8 sps:$4 sm:$0xff]  }
  0x5c   : > { %s1067_s12 = sshll.u32 %s1500_s7, 3  ;;  %369 = vmatprep.subr.bf16.mxu0 %v1138_v6  ;;  %v1147_v13 = vld [vmem:[%s1490_s15 + $0x34] ss:$8 sps:$4 sm:$0xff]   ;;  %v1149_v15 = vld [vmem:[%s1490_s15 + $0x30] ss:$8 sps:$4 sm:$0xff]   ;;  %vm363_vm2 = vcmask 654336  }
  0x5d   : > { %s295_s26 = scalar_lea.vmem %s1642_s4, %s1067_s12  ;;  %v1153_v16 = vld [vmem:[%s1490_s15 + $0x44] ss:$8 sps:$4 sm:$0xff]   ;;  %v994_v17 = vld [vmem:[%s1639_s1 + $0xc] sm:$0xf]  ;;  %v1158_v21 = vld [vmem:[%s1490_s15 + $0x74] ss:$8 sps:$4 sm:$0xff]   ;;  %s1584_s17 = scalar_lea.vmem %s1640_s2, %s1067_s12 }
  0x5e   : > { %v298_v2 = vld [vmem:[%s295_s26] sm:$0xff]  ;;  %v1059_v38 = vld [vmem:[%s1639_s1 + $0x8] sm:$0xf]  ;;  %v410_v45 = vshrl.u32 %v409_v40, 7  ;;  %s1069_s7 = sshll.u32 %s1367_s22, 8  ;;  %s862_s23 = scalar_lea.sflag [#allocation4], %s1486_s13 }
  0x5f   : > { %v1510_v4 = vcombine.high %v298_v2, %v298_v2  ;;  %v1006_v5 = vcombine.low %v298_v2, %v298_v2  ;;  %370 = vmatpush1.bf16.msra.mxu0 %v1140_v7  ;;  %v1152_v18 = vld [vmem:[%s1490_s15 + $0x64] ss:$8 sps:$4 sm:$0xff]   ;;  %v1155_v19 = vld [vmem:[%s1490_s15 + $0x40] ss:$8 sps:$4 sm:$0xff]   ;;  %v1156_v24 = vld [vmem:[%s1490_s15 + $0x70] ss:$8 sps:$4 sm:$0xff]   ;;  %s1594_s16 = scalar_lea.hbm %s1643_s5, %s1069_s7 }
  0x60   : > { %371 = vmatprep.subr.bf16.mxu0 %v1141_v9  ;;  %v1150_v20 = vld [vmem:[%s1490_s15 + $0x60] ss:$8 sps:$4 sm:$0xff]   ;;  %v299_v22 = vld [vmem:[#allocation2] sm:$0xf]  ;;  %v1162_v31 = vld [vmem:[%s1490_s15 + $0x90] ss:$8 sps:$4 sm:$0xff]  }
  0x61   : > { %1008 = vmatprep.subr.msk.bf16.mxu1 %vm431_vm0, %v1510_v4  ;;  %v1517_v8 = vsel %vm431_vm0, %v1006_v5, 0  ;;  %v1167_v23 = vld [vmem:[%s1490_s15 + $0xa4] ss:$8 sps:$4 sm:$0xff]   ;;  %v1159_v26 = vld [vmem:[%s1490_s15 + $0x80] ss:$8 sps:$4 sm:$0xff]   ;;  %v411_v46 = vsub.s32 0, %v410_v45 }
  0x62   : > { %439 = vmatpush1.bf16.msra.mxu1 %v1517_v8  ;;  %v1161_v25 = vld [vmem:[%s1490_s15 + $0x84] ss:$8 sps:$4 sm:$0xff]   ;;  %v1164_v27 = vld [vmem:[%s1490_s15 + $0x94] ss:$8 sps:$4 sm:$0xff]   ;;  %v1165_v28 = vld [vmem:[%s1490_s15 + $0xa0] ss:$8 sps:$4 sm:$0xff]  }
  0x63   : > { %1010 = vmatprep.subr.msk.bf16.mxu1 %vm431_vm0, %v1510_v4  ;;  %372 = vmatpush1.bf16.msra.mxu0 %v1143_v12  ;;  %v1034_v29 = vld [vmem:[%s1639_s1 + $0x4] sm:$0xf]  ;;  %v1170_v30 = vld [vmem:[%s1490_s15 + $0xb4] ss:$8 sps:$4 sm:$0xff]   ;;  %v1173_v33 = vld [vmem:[%s1490_s15 + $0xc4] ss:$8 sps:$4 sm:$0xff]  }
  0x64   : > { %373 = vmatprep.subr.bf16.mxu0 %v1147_v13  ;;  %v1168_v32 = vld [vmem:[%s1490_s15 + $0xb0] ss:$8 sps:$4 sm:$0xff]   ;;  %v1171_v34 = vld [vmem:[%s1490_s15 + $0xc0] ss:$8 sps:$4 sm:$0xff]   ;;  %v1176_v35 = vld [vmem:[%s1490_s15 + $0xd4] ss:$8 sps:$4 sm:$0xff]  }
  0x65   : > { %1009 = vmatmul.mubr.msk.bf16.vlgmr.msra.gmra.mrb[0].mxu1 %vm427_vm1, %v421_v10  ;;  %v1174_v36 = vld [vmem:[%s1490_s15 + $0xd0] ss:$8 sps:$4 sm:$0xff]   ;;  %v1179_v37 = vld [vmem:[%s1490_s15 + $0xe4] ss:$8 sps:$4 sm:$0xff]   ;;  %v1177_v39 = vld [vmem:[%s1490_s15 + $0xe0] ss:$8 sps:$4 sm:$0xff]  }
  0x66   : > { %485 = vmatpush1.bf16.msra.mxu1 %v1517_v8  ;;  %516 = vmatprep.mubr.bf16.mxu1 %v1314_v0  ;;  %v302_v48 = vld [vmem:[%s1584_s17] ss:$4 sm:$0x3]  ;;  %v415_v49 = vsub.s32 1, %v410_v45  ;;  %s989_s15 = sshll.u32 %s1486_s13, 4  ;;  %p1662_p2 = scmp.ne.s32.totalorder %s1651_s30, 0 }
  0x67   : > { %588 = vmatprep.subr.bf16.mxu1 %v1146_v11  ;;  %374 = vmatpush1.bf16.msra.mxu0 %v1149_v15  ;;  %v412_v52 = vrot.slane %v302_v48, %v411_v46  ;;  %v1012_v2 = vld [vmem:[%s1584_s17 + $0x1] ss:$4 sm:$0x3]  ;;  %s285_s12 = scalar_lea.vmem [#allocation7], %s989_s15  ;;  %s1315_s22 = smov [#allocation7]  }
  0x68   : > { %375 = vmatprep.subr.bf16.mxu0 %v1153_v16  ;;  %v416_v54 = vrot.slane %v302_v48, %v415_v49  ;;  %v633_v5 = vrot.slane %v1012_v2, %v411_v46  ;;  %v637_v7 = vrot.slane %v1012_v2, %v415_v49  ;;  %s876_s26 = sshll.u32 %s285_s12, 4  ;;  %s1242_s28 = sshll.u32 %s1315_s22, 4  ;;  %s1596_s26 = int_to_ptr.vmem [resolvable:$true] %s876_s26  ;;  %s1243_s28 = int_to_ptr.vmem [resolvable:$false] %s1242_s28 }
  0x69   : > { %s1238_s25 = scalar_lea.vmem %s1596_s26, 256  ;;  %s1244_s9 = scalar_lea.vmem %s1243_s28, 512 }
  0x6a   : > { %p1239_p10 = scmp.ne.s32.totalorder %s1596_s26, %s1238_s25  ;;  %p1245_p0 = scmp.lt.s32.totalorder %s1596_s26, %s1243_s28 }
  0x6b   : > { %376 = vmatpush1.bf16.msra.mxu0 %v1155_v19  ;;  %p1246_p6 = scmp.lt.s32.totalorder %s1244_s9, %s1238_s25 }
  0x6c   : > { %1035 = vmatprep.subr.msk.bf16.mxu0 %vm431_vm0, %v1510_v4  ;;  %p1240_p4 = pnand %p1239_p10, %p1662_p2 }
  0x6d   : > { %1011 = vmatmul.mubr.msk.bf16.vlgmr.msra.gmra.mrb[4].mxu1 %vm427_vm1, %v994_v17  ;;  %p1247_p13 = por %p1246_p6, %p1245_p0 }
  0x6e   : > { %589 = vmatpush1.bf16.msra.mxu1 %v1144_v14  ;;  %620 = vmatprep.mubr.bf16.mxu1 %v1314_v0  ;;  %p1241_p5 = pneg %p1240_p4 }
  0x6f   : > { %590 = vmatprep.subr.bf16.mxu1 %v1152_v18  ;;  %1005 = vmatmul.mubr.msk.bf16.vlgmr.msra.gmra.mrb[0].mxu0 %vm363_vm2, %v299_v22  ;;  %v1037_v18 = vld [vmem:[%s1584_s17 + $0x2] ss:$4 sm:$0x3] }
  0x70   : > { %648 = vmatpush1.bf16.msra.mxu0 %v1517_v8  ;;  %679 = vmatprep.mubr.bf16.mxu0 %v1314_v0  ;;  %p1248_p7 = pnand %p1247_p13, %p1241_p5 }
  0x71   : > { %755 = vmatprep.subr.bf16.mxu0 %v1167_v23 }
  0x72   : > { %591 = vmatpush1.bf16.msra.mxu1 %v1150_v20 }
  0x73   : > { %592 = vmatprep.subr.bf16.mxu1 %v1158_v21 }
  0x76   : > { %593 = vmatpush1.bf16.msra.mxu1 %v1156_v24  ;;  %v804_v24 = vrot.slane %v1037_v18, %v415_v49 }
  0x77   : > { %594 = vmatprep.subr.bf16.mxu1 %v1161_v25  ;;  %1036 = vmatmul.mubr.msk.bf16.vlgmr.msra.gmra.mrb[4].mxu0 %vm427_vm1, %v1034_v29 }
  0x78   : > { %756 = vmatpush1.bf16.msra.mxu0 %v1165_v28  ;;  %787 = vmatprep.mubr.bf16.mxu0 %v1314_v0 }
  0x79   : > { %757 = vmatprep.subr.bf16.mxu0 %v1170_v30 }
  0x7a   : > { %595 = vmatpush1.bf16.msra.mxu1 %v1159_v26 }
  0x7b   : > { %596 = vmatprep.subr.bf16.mxu1 %v1164_v27 }
  0x7c   : > { %758 = vmatpush1.bf16.msra.mxu0 %v1168_v32 }
  0x7d   : > { %759 = vmatprep.subr.bf16.mxu0 %v1173_v33 }
  0x7e   : > { %597 = vmatpush1.bf16.msra.mxu1 %v1162_v31 }
  0x7f   : > { %1060 = vmatprep.subr.msk.bf16.mxu1 %vm431_vm0, %v1510_v4 }
  0x80   : > { %760 = vmatpush1.bf16.msra.mxu0 %v1171_v34 }
  0x81   : > { %1033 = vmatmul.mubr.msk.bf16.vlgmr.msra.gmra.mrb[8].mxu1 %vm363_vm2, %v299_v22  ;;  %761 = vmatprep.subr.bf16.mxu0 %v1176_v35 }
  0x82   : > { %815 = vmatpush1.bf16.msra.mxu1 %v1517_v8  ;;  %846 = vmatprep.mubr.bf16.mxu1 %v1314_v0 }
  0x84   : > { %762 = vmatpush1.bf16.msra.mxu0 %v1174_v36 }
  0x85   : > { %763 = vmatprep.subr.bf16.mxu0 %v1179_v37 }
  0x88   : > { %764 = vmatpush1.bf16.msra.mxu0 %v1177_v39 }
  0x89   : > { %1061 = vmatmul.mubr.msk.bf16.vlgmr.msra.gmra.mrb[12].mxu1 %vm427_vm1, %v1059_v38 }
  0x8b   : > { %1058 = vmatmul.mubr.msk.bf16.vlgmr.msra.gmra.mrb[8].mxu0 %vm363_vm2, %v299_v22  ;;  %v800_v22 = vrot.slane %v1037_v18, %v411_v46 }
 0x138   : > { %v472_v41 = vpop.f32.mrb[0].mxu1 }
 0x139   : > { %v474_v42 = vpop.f32.mrb[1].mxu1 }
 0x13a   : > { %v476_v43 = vpop.f32.mrb[2].mxu1 }
 0x13b   : > { %v477_v44 = vpop.f32.mrb[3].mxu1 }
 0x140   : > { %v518_v47 = vpop.f32.mrb[4].mxu1 }
 0x141   : > { %v520_v50 = vpop.f32.mrb[5].mxu1 }
 0x142   : > { %v522_v51 = vpop.f32.mrb[6].mxu1  ;;  %v401_v55 = vpop.f32.mrb[0].mxu0 }
 0x143   : > { %v523_v53 = vpop.f32.mrb[7].mxu1  ;;  %v419_v56 = vadd.f32 %v412_v52, %v401_v55  ;;  %v403_v57 = vpop.f32.mrb[1].mxu0 }
 0x144   : > { %v420_v58 = vadd.f32 %v416_v54, %v403_v57  ;;  %v405_v59 = vpop.f32.mrb[2].mxu0 }
 0x145   : > { %v479_v60 = vmul.f32 %v472_v41, %v419_v56  ;;  %v406_v61 = vpop.f32.mrb[3].mxu0 }
 0x146   : > { %v480_v62 = vmul.f32 %v474_v42, %v420_v58 }
 0x147   : > { %v519_v63 = vadd.f32 %v518_v47, %v479_v60 }
 0x148   : > { %v521_v0 = vadd.f32 %v520_v50, %v480_v62 }
 0x14a   : > { %v681_v1 = vpop.f32.mrb[4].mxu0 }
 0x14b   : > { %v683_v3 = vpop.f32.mrb[5].mxu0 }
 0x14c   : > { %v685_v4 = vpop.f32.mrb[6].mxu0 }
 0x14d   : > { %v686_v6 = vpop.f32.mrb[7].mxu0 }
 0x154   : > { %v622_v8 = vpop.f32.mrb[8].mxu1 }
 0x155   : > { %v640_v9 = vadd.f32 %v633_v5, %v622_v8  ;;  %v624_v10 = vpop.f32.mrb[9].mxu1 }
 0x156   : > { %v641_v11 = vadd.f32 %v637_v7, %v624_v10  ;;  %v626_v12 = vpop.f32.mrb[10].mxu1 }
 0x157   : > { %v688_v13 = vmul.f32 %v681_v1, %v640_v9  ;;  %v627_v14 = vpop.f32.mrb[11].mxu1 }
 0x158   : > { %v689_v15 = vmul.f32 %v683_v3, %v641_v11 }
 0x159   : > { %v690_v16 = vadd.f32 %v688_v13, %v519_v63 }
 0x15a   : > { %v691_v17 = vadd.f32 %v689_v15, %v521_v0 }
 0x15c   : > { %v848_v19 = vpop.f32.mrb[12].mxu1 }
 0x15d   : > { %v850_v20 = vpop.f32.mrb[13].mxu1 }
 0x15e   : > { %v852_v21 = vpop.f32.mrb[14].mxu1  ;;  %v789_v25 = vpop.f32.mrb[8].mxu0 }
 0x15f   : > { %v853_v23 = vpop.f32.mrb[15].mxu1  ;;  %v807_v26 = vadd.f32 %v800_v22, %v789_v25  ;;  %v791_v27 = vpop.f32.mrb[9].mxu0 }
 0x160   : > { %v808_v28 = vadd.f32 %v804_v24, %v791_v27  ;;  %v793_v29 = vpop.f32.mrb[10].mxu0 }
 0x161   : > { %v855_v30 = vmul.f32 %v848_v19, %v807_v26  ;;  %v794_v31 = vpop.f32.mrb[11].mxu0 }
 0x162   : > { %v856_v32 = vmul.f32 %v850_v20, %v808_v28 }
 0x163   : > { %v857_v33 = vadd.f32 %v855_v30, %v690_v16 }
 0x164   : > { %v858_v34 = vadd.f32 %v856_v32, %v691_v17 }
 0x165   : > { %859 = vst [vmem:[%s285_s12] sm:$0xff] %v857_v33 }
 0x166   : > { %860 = vst [vmem:[%s285_s12 + $0x8] sm:$0xff] %v858_v34 }
 0x167   : > { %1251 = shalt.err (!%p1248_p7)
}
 0x168   : > { %s1252_s13 = scalar_lea.hbm %s1594_s16, 256  ;;  %s1256_s29 = scalar_lea.hbm %s1643_s5, 512 }
 0x169   : > { %p1253_p3 = scmp.ne.s32.totalorder %s1594_s16, %s1252_s13  ;;  %p1257_p8 = scmp.lt.u32.totalorder %s1594_s16, %s1643_s5 }
 0x16a   : > { %p1258_p11 = scmp.lt.u32.totalorder %s1256_s29, %s1252_s13  ;;  %p1260_p10 = scmp.lt.u32.totalorder %s1252_s13, %s1594_s16 }
 0x16b   : > { %p1254_p12 = pnand %p1253_p3, %p1662_p2 }
 0x16c   : > { %p1259_p9 = por %p1258_p11, %p1257_p8 }
 0x16d   : > { %p1255_p1 = pneg %p1254_p12 }
 0x16e   : > { %p1261_p4 = por %p1260_p10, %p1259_p9 }
 0x170   : > { %p1262_p5 = pnand %p1261_p4, %p1255_p1 }
 0x172   : > { %1265 = shalt.err (!%p1262_p5)
}
 0x173   : > { %1079 = dma.vmem_to_hbm [thread:$0]  (%p1662_p2), %s1596_s26, 256, %s1594_s16, %s862_s23  }
 0x174 PF: > { %s888_s7 = sand.u32 1, %s1296_s18   ;;  %p1663_p0 = scmp.ne.s32.totalorder %s1652_s6, 0 }
 0x175   : > { %p1664_p6 = scmp.ge.s32.totalorder %s1308_s21, 2  ;;  %s889_s12 = scalar_lea.sflag [#allocation4], %s888_s7 }
 0x177   : > { %p1090_p13 = pnand %p1664_p6, %p1663_p0 }
 0x179   : > { %1291 = dma.done.wait (!%p1090_p13), %s889_s12, 256  }
 0x17a   : > { %1293 = vsyncadd (!%p1090_p13), %s889_s12, 4294967040  ;;  %p19_p7 = scmp.ge.s32.totalorder %s1371_s24, 4   ;;  %s1665_s18 = smov %s1300_s19 }
 0x17b   : > { %s1666_s19 = smov %s1304_s20  ;;  %s1667_s20 = smov %s1383_s27 }
 0x17c   : > { %s1668_s21 = smov %s1371_s24  ;;  %21 = sbr.rel (!%p19_p7) target bundleno = 6 (0x6), region = 103 }
 0x183   :  { %894 = vsyncpa [#allocation3], 1 }
 0x184   :  { %896 = vsyncpa [#allocation3 + $0x1], 1 }
 0x185   :  { %897 = vsyncpa [#allocation6], 1 }
 0x186   :  { %899 = vsyncpa [#allocation6 + $0x1], 1 }
 0x187   :  { %900 = vsyncpa [#allocation4], 1 }
 0x188   :  { %902 = vsyncpa [#allocation4 + $0x1], 1 }

</bundles_post_ra>
